<compile_context>
chip_gen: v6e
topology: v6e:2x2x1
jax: 0.10.0
libtpu: 0.0.40
codegen_flags: <defaults>
</compile_context>

<pallas_src>
import numpy as np
import jax
import jax.numpy as jnp
from jax.experimental import pallas as pl
from jax.experimental.pallas import tpu as pltpu


# ----------------------------------------------------------------------------
# small helpers
# ----------------------------------------------------------------------------
def _round_up(v: int, m: int) -> int:
    return ((v + m - 1) // m) * m


def _largest_aligned_divisor(total: int, cap: int) -> int:
    """Largest multiple of 128 that divides `total` (a multiple of 128), <= cap."""
    best, d, top = 128, 128, min(total, cap)
    while d <= top:
        if total % d == 0:
            best = d
        d += 128
    return best


def _vmem_limit_bytes() -> int:
    """Generation-aware scoped-VMEM limit (leave headroom under physical VMEM)."""
    try:
        cap = int(getattr(pltpu.get_tpu_info(), "vmem_capacity_bytes"))
    except Exception:
        cap = 64 * 1024 * 1024                      # conservative (v7x-sized) fallback
    return int(min(96 * 1024 * 1024, max(32 * 1024 * 1024, (cap * 3) // 4)))


# ----------------------------------------------------------------------------
# operator setup (host-side numpy, built tile-by-tile)
# ----------------------------------------------------------------------------
def _build_circle_mask(cols: int) -> np.ndarray:
    c = 0.5 * (cols - 1)
    yy, xx = np.meshgrid(np.arange(cols, dtype=np.float32),
                         np.arange(cols, dtype=np.float32), indexing="ij")
    r = 0.5 * cols
    return (((yy - c) ** 2 + (xx - c) ** 2) <= r * r).astype(np.float32)


def _build_At_chunk(row_lo, row_hi, nr_angles, cols, pixel_size, angular_range):
    """Columns [row_lo, row_hi) of At (shape (K, nrows)); ray index = angle*cols + det.
    Bilinear-sampled line integral, LEAP parallel-beam geometry (centerCol=(cols-1)/2,
    phis = i * angular_range / nr_angles)."""
    K = cols * cols
    rows = np.arange(row_lo, row_hi)
    ang = (rows // cols).astype(np.float32)
    det = (rows % cols).astype(np.float32)
    nrows = rows.shape[0]

    phis = np.deg2rad(ang * (angular_range / nr_angles)).astype(np.float32)
    center = 0.5 * (cols - 1)
    s_det = (det - center) * pixel_size

    dt = 0.5 * pixel_size
    half_diag = 0.5 * cols * pixel_size * np.sqrt(2.0)
    nt = int(np.ceil(2.0 * half_diag / dt)) + 1
    t = (np.arange(nt, dtype=np.float32) - 0.5 * (nt - 1)) * dt

    cph = np.cos(phis)[:, None]
    sph = np.sin(phis)[:, None]
    S = s_det[:, None]
    T = t[None, :]
    x = S * cph - T * sph
    y = S * sph + T * cph
    px = x / pixel_size + center
    py = y / pixel_size + center

    ix0 = np.floor(px).astype(np.int64)
    iy0 = np.floor(py).astype(np.int64)
    fx = (px - ix0).astype(np.float32)
    fy = (py - iy0).astype(np.float32)

    row_idx = np.broadcast_to(np.arange(nrows)[:, None], px.shape)
    A_chunk = np.zeros((nrows, K), dtype=np.float32)
    for di, dj, w in ((0, 0, (1.0 - fy) * (1.0 - fx)),
                      (0, 1, (1.0 - fy) * fx),
                      (1, 0, fy * (1.0 - fx)),
                      (1, 1, fy * fx)):
        iy = iy0 + di
        ix = ix0 + dj
        valid = (ix >= 0) & (ix < cols) & (iy >= 0) & (iy < cols)
        wv = (np.where(valid, w, 0.0) * dt).astype(np.float32)
        flat = np.clip(iy, 0, cols - 1) * cols + np.clip(ix, 0, cols - 1)
        np.add.at(A_chunk, (row_idx.ravel(), flat.ravel()), wv.ravel())
    return A_chunk.T                                           # (K, nrows)


# ----------------------------------------------------------------------------
# projector factory: block-sparse int8 weight matmul kernel
# ----------------------------------------------------------------------------
def make_projector(*, nr_angles: int, cols: int, rows: int = 1, pixel_size: float = 1.0,
                   angular_range: float = 180.0, circle_mask: bool = False,
                   normalization: str = "zero_to_one",
                   tk_max: int = 1024, tn_max: int = 2048, build_reference: bool = True):
    assert rows == 1, "only rows=1 (2-D slices) supported"
    K = cols * cols
    N = nr_angles * cols

    if normalization == "zero_to_one":            # x / cols
        norm_scale, offset = 1.0 / cols, 0.0
    elif normalization == "minus_one_to_one":     # x / cols * 2 - 1
        norm_scale, offset = 2.0 / cols, -1.0
    else:                                         # identity
        norm_scale, offset = 1.0, 0.0

    # --- tiling: pad only to 128, pick 128-aligned divisor tiles (no tile waste) ---
    K128 = _round_up(K, 128)
    N128 = _round_up(N, 128)
    tk = _largest_aligned_divisor(K128, tk_max)
    tn = _largest_aligned_divisor(N128, tn_max)
    # keep >= 2 parallel N tiles so megacore / v7x 2-TC sharding is possible
    while (N128 // tn) < 2 and tn >= 256 and (tn // 2) % 128 == 0:
        tn //= 2
    num_n_tiles = N128 // tn
    num_k_blocks = K128 // tk

    mask_flat = (_build_circle_mask(cols).reshape(K) if circle_mask
                 else np.ones((K,), np.float32))

    # --- build fused operator tile-by-tile, quantize to int8, pack nonzero K-blocks ---
    qscale = np.full((1, N128), 1e-30, dtype=np.float32)
    tiles = []                                                   # per n-tile: [(kblk, int8 blk)]
    At_ref = np.zeros((K, N), dtype=np.float32) if build_reference else None

    for n in range(num_n_tiles):
        col_lo = n * tn
        col_hi = min(col_lo + tn, N)
        chunk = np.zeros((K128, tn), dtype=np.float32)
        if col_lo < N:
            dense = _build_At_chunk(col_lo, col_hi, nr_angles, cols,
                                    pixel_size, angular_range)   # (K, ncols)
            dense *= mask_flat[:, None]                          # fold circle mask
            dense *= norm_scale                                  # fold normalization scale
            if At_ref is not None:
                At_ref[:, col_lo:col_hi] = dense
            chunk[:K, :col_hi - col_lo] = dense
        qs = np.maximum(np.abs(chunk).max(axis=0), 1e-30) / 127.0
        qscale[0, col_lo:col_lo + tn] = qs
        q = np.clip(np.rint(chunk / qs[None, :]), -127, 127).astype(np.int8)
        blocks = []
        for kb in range(num_k_blocks):
            blk = q[kb * tk:(kb + 1) * tk, :]
            if blk.any():
                blocks.append((kb, blk))
        tiles.append(blocks)

    max_nnz = max(1, max(len(b) for b in tiles))
    W_packed = np.zeros((num_n_tiles, max_nnz, tk, tn), dtype=np.int8)
    kblk_tbl = np.zeros((num_n_tiles * max_nnz,), dtype=np.int32)
    for n, blocks in enumerate(tiles):
        for s, (kb, blk) in enumerate(blocks):
            W_packed[n, s] = blk
            kblk_tbl[n * max_nnz + s] = kb

    W_dev = jnp.asarray(W_packed)          # (num_n_tiles, max_nnz, tk, tn) int8
    tbl_dev = jnp.asarray(kblk_tbl)        # (num_n_tiles*max_nnz,) int32 (SMEM prefetch)
    qs_dev = jnp.asarray(qscale)           # (1, N128) f32 per-output-column dequant scale

    grid = (num_n_tiles, max_nnz)          # parallel N tiles, sparse-K reduction last
    vmem_limit = _vmem_limit_bytes()

    # ------------------------------------------------------------------ kernel
    def kernel(tbl_ref, x_ref, w_ref, qs_ref, o_ref):
        s = pl.program_id(1)

        @pl.when(s == 0)
        def _():
            o_ref[...] = jnp.zeros_like(o_ref)

        # int8 weights dequantized on the fly to bf16 (exact, |w|<=127); bf16 x bf16
        # on the MXU with f32 accumulation directly into the resident output tile.
        o_ref[...] += jnp.dot(x_ref[...], w_ref[...].astype(jnp.bfloat16),
                              preferred_element_type=jnp.float32)

        @pl.when(s == pl.num_programs(1) - 1)
        def _():
            res = o_ref[...] * qs_ref[...]       # per-column int8 scale (+ norm scale)
            if offset != 0.0:
                res = res + jnp.float32(offset)
            o_ref[...] = res

    # ------------------------------------------------------------------ wrapper
    def forward(x):
        # x: (B, rows=1, cols, cols).  Amortize the weight stream over the batch:
        # the larger B is (>=128 ideally), the closer this runs to the HBM roofline.
        B = x.shape[0]
        BP = _round_up(max(B, 16), 16)           # bf16 sublane packing (>=16 rows)
        xf = x.astype(jnp.float32).reshape(B, K)
        xp = (jnp.zeros((BP, K128), jnp.float32).at[:B, :K].set(xf)
              ).astype(jnp.bfloat16)

        out = pl.pallas_call(
            kernel,
            out_shape=jax.ShapeDtypeStruct((BP, N128), jnp.float32),
            grid_spec=pltpu.PrefetchScalarGridSpec(
                num_scalar_prefetch=1,
                grid=grid,
                in_specs=[
                    # image pixels: gather the k-block this step needs via the table
                    pl.BlockSpec((BP, tk),
                                 lambda n, s, tbl: (0, tbl[n * max_nnz + s])),
                    # packed nonzero weight blocks (int8)
                    pl.BlockSpec((None, None, tk, tn),
                                 lambda n, s, tbl: (n, s, 0, 0)),
                    # per-output-column dequant scales
                    pl.BlockSpec((1, tn), lambda n, s, tbl: (0, n)),
                ],
                out_specs=pl.BlockSpec((BP, tn), lambda n, s, tbl: (0, n)),
            ),
            compiler_params=pltpu.CompilerParams(
                dimension_semantics=("parallel", "arbitrary"),
                vmem_limit_bytes=vmem_limit,
            ),
        )(tbl_dev, xp, W_dev, qs_dev)
        return out[:B, :N].reshape(B, nr_angles, rows, cols)

    def reference(x):
        assert At_ref is not None
        B = x.shape[0]
        xf = np.asarray(jax.device_get(x), np.float32).reshape(B, K)
        out = xf @ At_ref + offset               # mask & norm scale already fused
        return out.reshape(B, nr_angles, rows, cols)

    return forward, reference


# ----------------------------------------------------------------------------
if __name__ == "__main__":
    batch_size = 2
    nr_angles = 16
    cols = 32
    rows = 1

    forward, reference = make_projector(
        nr_angles=nr_angles, cols=cols, rows=rows, pixel_size=1.0,
        angular_range=180.0, circle_mask=True, normalization="zero_to_one")

    key = jax.random.PRNGKey(0)
    x = jax.random.uniform(key, (batch_size, rows, cols, cols), dtype=jnp.float32)

    sino = forward(x)
    sino = jax.block_until_ready(sino)

    ref = reference(x)
    assert sino.shape == (batch_size, nr_angles, rows, cols), sino.shape
    # int8 weights (per-column scales) + bf16 activations, f32 accumulation.
    assert np.allclose(np.asarray(sino), ref, rtol=2e-2, atol=2e-2)

    print("KERNEL_OK")
</pallas_src>

<mosaic_0001>
module attributes {stable_mosaic.version = 11 : i64} {
  func.func @kernel(%arg0: i32, %arg1: i32, %arg2: memref<2xi32, #tpu.memory_space<smem>>, %arg3: memref<16x1024xbf16, #tpu.memory_space<vmem>>, %arg4: memref<1x1x1024x256xi8, #tpu.memory_space<vmem>>, %arg5: memref<1x256xf32, #tpu.memory_space<vmem>>, %arg6: memref<16x256xf32, #tpu.memory_space<vmem>>) attributes {dimension_semantics = [#tpu.dimension_semantics<parallel>, #tpu.dimension_semantics<arbitrary>], iteration_bounds = array<i64: 2, 1>, scalar_prefetch = 1 : i64, scratch_operands = 0 : i64, tpu.core_type = #tpu.core_type<tc>, window_params = [{transform_indices = @transform_0, window_bounds = array<i64: 16, 1024>}, {transform_indices = @transform_1, window_bounds = array<i64: 1, 1, 1024, 256>}, {transform_indices = @transform_2, window_bounds = array<i64: 1, 256>}, {transform_indices = @transform_3, window_bounds = array<i64: 16, 256>}]} {
    %c0_i32 = arith.constant 0 : i32
    %0 = arith.cmpi eq, %arg1, %c0_i32 : i32
    %1 = arith.extui %0 : i1 to i32
    %c0_i32_0 = arith.constant 0 : i32
    %2 = arith.cmpi ne, %1, %c0_i32_0 : i32
    scf.if %2 {
      %cst_12 = arith.constant 0.000000e+00 : f32
      %14 = vector.broadcast %cst_12 : f32 to vector<16x256xf32>
      %c0_13 = arith.constant 0 : index
      %c0_14 = arith.constant 0 : index
      %15 = vector.load %arg6[%c0_13, %c0_14] : memref<16x256xf32, #tpu.memory_space<vmem>>, vector<16x256xf32>
      tpu.vector_store %arg6[%c0_13, %c0_14], %14 {strides = array<i32>} : memref<16x256xf32, #tpu.memory_space<vmem>>, vector<16x256xf32>,
    } else {
    }
    %c0 = arith.constant 0 : index
    %c0_1 = arith.constant 0 : index
    %3 = vector.load %arg6[%c0, %c0_1] : memref<16x256xf32, #tpu.memory_space<vmem>>, vector<16x256xf32>
    %c0_2 = arith.constant 0 : index
    %c0_3 = arith.constant 0 : index
    %4 = vector.load %arg3[%c0_2, %c0_3] : memref<16x1024xbf16, #tpu.memory_space<vmem>>, vector<16x1024xbf16>
    %c0_4 = arith.constant 0 : index
    %c0_5 = arith.constant 0 : index
    %c0_6 = arith.constant 0 : index
    %c0_7 = arith.constant 0 : index
    %5 = vector.load %arg4[%c0_4, %c0_5, %c0_6, %c0_7] : memref<1x1x1024x256xi8, #tpu.memory_space<vmem>>, vector<1x1x1024x256xi8>
    %6 = vector.shape_cast %5 : vector<1x1x1024x256xi8> to vector<1024x256xi8>
    %7 = arith.sitofp %6 : vector<1024x256xi8> to vector<1024x256xbf16>
    %cst = arith.constant dense<0.000000e+00> : vector<16x256xf32>
    %8 = tpu.matmul %4, %7, %cst {dimension_numbers = #tpu.dot_dimension_numbers<[1], [0], [0], [1], [0, 0, 1, 1], [], []>} : vector<16x1024xbf16>, vector<1024x256xbf16>, vector<16x256xf32> -> vector<16x256xf32>
    %9 = arith.addf %3, %8 : vector<16x256xf32>
    %c0_8 = arith.constant 0 : index
    %c0_9 = arith.constant 0 : index
    %10 = vector.load %arg6[%c0_8, %c0_9] : memref<16x256xf32, #tpu.memory_space<vmem>>, vector<16x256xf32>
    tpu.vector_store %arg6[%c0_8, %c0_9], %9 {strides = array<i32>} : memref<16x256xf32, #tpu.memory_space<vmem>>, vector<16x256xf32>,
    %c0_i32_10 = arith.constant 0 : i32
    %11 = arith.cmpi eq, %arg1, %c0_i32_10 : i32
    %12 = arith.extui %11 : i1 to i32
    %c0_i32_11 = arith.constant 0 : i32
    %13 = arith.cmpi ne, %12, %c0_i32_11 : i32
    scf.if %13 {
      %c0_12 = arith.constant 0 : index
      %c0_13 = arith.constant 0 : index
      %14 = vector.load %arg6[%c0_12, %c0_13] : memref<16x256xf32, #tpu.memory_space<vmem>>, vector<16x256xf32>
      %c0_14 = arith.constant 0 : index
      %c0_15 = arith.constant 0 : index
      %15 = vector.load %arg5[%c0_14, %c0_15] : memref<1x256xf32, #tpu.memory_space<vmem>>, vector<1x256xf32>
      %16 = vector.broadcast %15 : vector<1x256xf32> to vector<16x256xf32>
      %17 = arith.mulf %14, %16 : vector<16x256xf32>
      %c0_16 = arith.constant 0 : index
      %c0_17 = arith.constant 0 : index
      %18 = vector.load %arg6[%c0_16, %c0_17] : memref<16x256xf32, #tpu.memory_space<vmem>>, vector<16x256xf32>
      tpu.vector_store %arg6[%c0_16, %c0_17], %17 {strides = array<i32>} : memref<16x256xf32, #tpu.memory_space<vmem>>, vector<16x256xf32>,
    } else {
    }
    return
  }
  func.func @transform_0(%arg0: i32, %arg1: i32, %arg2: memref<2xi32, #tpu.memory_space<smem>>) -> (i32, i32) {
    %c1_i32 = arith.constant 1 : i32
    %0 = arith.muli %arg0, %c1_i32 : i32
    %1 = arith.addi %0, %arg1 : i32
    %2 = arith.index_cast %1 : i32 to index
    %3 = memref.load %arg2[%2] : memref<2xi32, #tpu.memory_space<smem>>
    %c0_i32 = arith.constant 0 : i32
    %c0_i32_0 = arith.constant 0 : i32
    return %c0_i32, %3 : i32, i32
  }
  func.func @transform_1(%arg0: i32, %arg1: i32, %arg2: memref<2xi32, #tpu.memory_space<smem>>) -> (i32, i32, i32, i32) {
    %c0_i32 = arith.constant 0 : i32
    %c0_i32_0 = arith.constant 0 : i32
    %c0_i32_1 = arith.constant 0 : i32
    return %arg0, %arg1, %c0_i32, %c0_i32_0 : i32, i32, i32, i32
  }
  func.func @transform_2(%arg0: i32, %arg1: i32, %arg2: memref<2xi32, #tpu.memory_space<smem>>) -> (i32, i32) {
    %c0_i32 = arith.constant 0 : i32
    %c0_i32_0 = arith.constant 0 : i32
    return %c0_i32, %arg0 : i32, i32
  }
  func.func @transform_3(%arg0: i32, %arg1: i32, %arg2: memref<2xi32, #tpu.memory_space<smem>>) -> (i32, i32) {
    %c0_i32 = arith.constant 0 : i32
    %c0_i32_0 = arith.constant 0 : i32
    return %c0_i32, %arg0 : i32, i32
  }
}

</mosaic_0001>

<bundles_post_ra>
// kernel: tpu_custom_call.1
= control target key start
LH: loop header
LB: loop body
LE: loop exit
PB: predicated region body
PF: predicated region fallthrough
CT: control target
= control target key end

     0   :  { %s1179_s15 = smov [#allocation3]   ;;  %s1593_s0 = inlined_call_operand.hbm [shape: s32[2], index: 0, kind: input, shape index: {}]   ;;  %s1594_s1 = inlined_call_operand.hbm [shape: bf16[16,1024], index: 1, kind: input, shape index: {}]   ;;  %s1595_s2 = inlined_call_operand.hbm [shape: s8[2,1,1024,256], index: 2, kind: input, shape index: {}]   ;;  %s1596_s3 = inlined_call_operand.vmem [shape: f32[1,512], index: 3, kind: input, shape index: {}]   ;;  %s1597_s4 = inlined_call_operand.hbm [shape: f32[16,512], index: 4, kind: output, shape index: {}]  }
   0x1   :  { %1604 = sst [smem:[#allocation17_spill]] %s1594_s1 }
   0x2   :  { %10 = dma.hbm_to_smem %s1593_s0, 16, %s1179_s15, [#allocation2] }
   0x3   :  { %1129 = dma.done.wait [#allocation2], 16 }
   0x4   :  { %1130 = vsyncadd [#allocation2], 4294967280 }
   0x5   :  { %12 = sfence }
   0x6   :  { %13 = vsyncpa [#allocation5], 0 }
   0x7   :  { %15 = vsyncpa [#allocation5 + $0x1], 0 }
   0x8   :  { %16 = vsyncpa [#allocation8], 0 }
   0x9   :  { %18 = vsyncpa [#allocation8 + $0x1], 0 }
   0xa   :  { %19 = vsyncpa [#allocation6], 0 }
   0xb   :  { %21 = vsyncpa [#allocation6 + $0x1], 0  ;;  %s1218_s18 = smov 0   ;;  %s1220_s19 = smov 0  }
   0xc   :  { %s1222_s20 = smov 0   ;;  %s1224_s21 = smov 0  }
   0xd   :  { %s1226_s22 = smov 0   ;;  %s1228_s0 = smov 0  }
   0xe   :  { %s1230_s23 = smov 0   ;;  %s1232_s24 = smov 0  }
   0xf   :  { %s1234_s25 = smov 0  }
  0x10 LB: > { %s1598_s26 = sadd.s32 4294967295, %s1177_s25   ;;  %s39_s27 = sadd.s32 1, %s1173_s24  ;;  %s1177_s25 = sphi %s1234_s25, %s27_s25   ;;  %s1173_s24 = sphi %s1232_s24, %s1634_s24   ;;  %s1169_s23 = sphi %s1230_s23, %s1633_s23   ;;  %s1165_s0 = sphi %s1228_s0, %s1632_s0   ;;  %s1161_s22 = sphi %s1226_s22, %s1631_s22   ;;  %s1157_s21 = sphi %s1224_s21, %s1630_s21   ;;  %s1153_s20 = sphi %s1222_s20, %s1629_s20   ;;  %s1149_s19 = sphi %s1220_s19, %s1628_s19   ;;  %s1145_s18 = sphi %s1218_s18, %s1627_s18  }
  0x11   : > { %p41_p0 = scmp.ge.s32.totalorder %s39_s27, 2  ;;  %s44_s28 = sld [smem:[#allocation3 + %s1173_s24]] }
  0x12   : > { %s50_s29 = sadd.s32 1, %s1165_s0  ;;  %p57_p1 = scmp.ne.s32.totalorder %s1165_s0, %s1161_s22 }
  0x13   : > { %s1636_s27 = smov (%p41_p0, %s39_s27), 0  ;;  %p1601_p2 = scmp.eq.s32.totalorder %s1177_s25, 0 }
  0x14   : > { %1605 = sst [smem:[#allocation16_spill]] %s1636_s27  ;;  %p63_p3 = scmp.ne.s32.totalorder %s1161_s22, %s1157_s21 }
  0x15   : > { %s46_s30 = sld [smem:[#allocation3 + %s1636_s27]]  ;;  %p1274_p4 = scmp.eq.s32.totalorder %s1598_s26, 0 }
  0x16   : > { %p1280_p5 = por %p1601_p2, %p57_p1  ;;  %p1600_p8 = scmp.lt.s32.totalorder %s1177_s25, 2 }
  0x17   : > { %s1606_s5 = scalar_select %p1274_p4, 1, 0 }
  0x18   : > { %p1287_p7 = por %p1274_p4, %p63_p3  ;;  %s167_s8 = sand.u32 1, %s1165_s0  }
  0x19   : > { %s872_s9 = sshll.u32 %s167_s8, 6  ;;  %p1297_p9 = pnand %p1600_p8, %p1280_p5 }
  0x1a   : > { %s1608_s7 = scalar_select %p1287_p7, 1, 0 }
  0x1b   : > { %s47_s11 = ssub.s32 %s44_s28, %s46_s30  ;;  %s171_s12 = scalar_lea.vmem [#allocation4], %s872_s9 }
  0x1c   : > { %s180_s13 = sshll.u32 %s171_s12, 4  ;;  %p48_p10 = scmp.eq.s32.totalorder %s47_s11, 0  ;;  %s1301_s13 = int_to_ptr.vmem [resolvable:$true] %s180_s13 }
  0x1d   : > { %s899_s14 = scalar_select %p1280_p5, [#allocation3], [#allocation10] }
  0x1e   : > { %s1306_s15 = scalar_select %p48_p10, %s1165_s0, %s50_s29  }
  0x1f   : > { %s900_s16 = scalar_select %p1280_p5, %s1173_s24, 0 }
  0x20   : > { %s1638_s14 = smov (!%p1600_p8, %s899_s14), [#allocation11]  ;;  %p878_p11 = scmp.ge.s32.totalorder %s1177_s25, 1 }
  0x21   : > { %s1640_s16 = smov (!%p1600_p8, %s900_s16), 0  ;;  %p219_p12 = scmp.lt.s32.totalorder %s1177_s25, 3 }
  0x22   : > { %s173_s17 = sld [smem:[%s1638_s14 + %s1640_s16]]  ;;  %s73_s30 = ssub.s32 %s1173_s24, %s1636_s27 }
  0x23   : > { %p1317_p13 = pnand %p878_p11, %p219_p12  ;;  %p1324_p0 = scmp.eq.s32.totalorder %s73_s30, 0 }
  0x24   : > { %s1612_s1 = sld [smem:[#allocation17_spill]]  ;;  %s78_s14 = sadd.s32 1, %s1153_s20 }
  0x25   : > { %s1610_s21 = scalar_select %p1317_p13, 1, 0 }
  0x26   : > { %s1611_s29 = scalar_select %p1324_p0, 1, 0 }
  0x27   : > { %s1334_s16 = scalar_lea.sflag [#allocation5], %s167_s8  ;;  %p1013_p3 = pneg %p1297_p9 }
  0x28   : > { %s896_s9 = sshll.u32 %s173_s17, 9 }
  0x2a   : > { %s1331_s12 = scalar_lea.hbm %s1612_s1, %s896_s9  ;;  %s1016_s28 = scalar_lea.hbm %s1612_s1, 1024 }
  0x2b   : > { %s1011_s26 = scalar_lea.hbm %s1331_s12, 1024  ;;  %p1017_p11 = scmp.lt.s32.totalorder %s1331_s12, %s1612_s1 }
  0x2c   : > { %p1012_p1 = scmp.ne.s32.totalorder %s1331_s12, %s1011_s26  ;;  %p1018_p12 = scmp.lt.s32.totalorder %s1016_s28, %s1011_s26 }
  0x2e   : > { %p1014_p5 = pnand %p1013_p3, %p1012_p1  ;;  %p1019_p6 = por %p1018_p12, %p1017_p11 }
  0x30   : > { %p1015_p10 = pneg %p1014_p5 }
  0x32   : > { %p1020_p8 = pnand %p1019_p6, %p1015_p10 }
  0x34   : > { %1023 = shalt.err (!%p1020_p8)
}
  0x35   : > { %s1024_s8 = scalar_lea.vmem %s1301_s13, 1024  ;;  %s1180_s9 = smov [#allocation4]  }
  0x36   : > { %p1025_p2 = scmp.ne.s32.totalorder %s1301_s13, %s1024_s8  ;;  %s1029_s11 = sshll.u32 %s1180_s9, 4  ;;  %s1030_s11 = int_to_ptr.vmem [resolvable:$false] %s1029_s11 }
  0x37   : > { %s1031_s17 = scalar_lea.vmem %s1030_s11, 2048  ;;  %p1032_p5 = scmp.lt.s32.totalorder %s1301_s13, %s1030_s11 }
  0x38   : > { %p1027_p7 = pnand %p1025_p2, %p1013_p3  ;;  %p1033_p13 = scmp.lt.s32.totalorder %s1031_s17, %s1024_s8 }
  0x3a   : > { %p1028_p1 = pneg %p1027_p7  ;;  %p1034_p4 = por %p1033_p13, %p1032_p5 }
  0x3c   : > { %p1035_p0 = pnand %p1034_p4, %p1028_p1 }
  0x3e   : > { %1038 = shalt.err (!%p1035_p0)
}
  0x3f   : > { %s1181_s26 = smov 512   ;;  %s1182_s27 = smov 32  }
  0x40   : > { %912 = dma.hbm_to_vmem [thread:$0]  (!%p1297_p9), %s1331_s12, 1024, %s1301_s13, %s1334_s16, %s1181_s26, %s1181_s26, %s1182_s27  }
  0x41   : > { %p1613_p2 = scmp.ne.s32.totalorder %s1611_s29, 0  ;;  %p85_p4 = scmp.ne.s32.totalorder %s1153_s20, %s1149_s19 }
  0x42   : > { %p91_p6 = scmp.ne.s32.totalorder %s1149_s19, %s1145_s18  ;;  %s1614_s30 = sadd.s32 4294967295, %s1177_s25  }
  0x43   : > { %s1360_s28 = scalar_select %p1613_p2, %s1153_s20, %s78_s14  }
  0x44   : > { %p141_p7 = scmp.eq.s32.totalorder %s1614_s30, 1  ;;  %s1615_s6 = sadd.s32 4294967294, %s1177_s25  }
  0x45   : > { %p147_p8 = scmp.eq.s32.totalorder %s1615_s6, 1  ;;  %p1616_p13 = scmp.eq.s32.totalorder %s1177_s25, 0 }
  0x46   : > { %p1617_p3 = scmp.ne.s32.totalorder %s1606_s5, 0  ;;  %p1378_p11 = por %p141_p7, %p85_p4 }
  0x47   : > { %p87_p0 = por %p85_p4, %p1616_p13  ;;  %p1382_p9 = por %p147_p8, %p91_p6 }
  0x48   : > { %p1374_p10 = por %p91_p6, %p1617_p3  ;;  %s190_s29 = sand.u32 1, %s1153_s20  }
  0x49   : > { %s897_s12 = sshll.u32 %s1173_s24, 13  ;;  %s875_s14 = sshll.u32 %s190_s29, 9 }
  0x4a   : > { %s202_s11 = scalar_lea.hbm %s1595_s2, %s897_s12  ;;  %s194_s5 = scalar_lea.vmem [#allocation7], %s875_s14 }
  0x4b   : > { %s203_s17 = sshll.u32 %s194_s5, 4  ;;  %p1621_p12 = scmp.lt.s32.totalorder %s1177_s25, 2  ;;  %s204_s17 = int_to_ptr.vmem [resolvable:$true] %s203_s17 }
  0x4c   : > { %s191_s27 = scalar_lea.sflag [#allocation8], %s190_s29  ;;  %s1052_s30 = scalar_lea.vmem %s204_s17, 8192 }
  0x4d   : > { %p1393_p1 = pnand %p1621_p12, %p87_p0  ;;  %p1053_p2 = scmp.ne.s32.totalorder %s204_s17, %s1052_s30 }
  0x4e   : > { %s1183_s6 = smov [#allocation7]  }
  0x4f   : > { %p1041_p5 = pneg %p1393_p1  ;;  %s1057_s1 = sshll.u32 %s1183_s6, 4  ;;  %s1058_s1 = int_to_ptr.vmem [resolvable:$false] %s1057_s1 }
  0x50   : > { %s1059_s12 = scalar_lea.vmem %s1058_s1, 16384  ;;  %p1060_p7 = scmp.lt.s32.totalorder %s204_s17, %s1058_s1 }
  0x51   : > { %p1055_p4 = pnand %p1053_p2, %p1041_p5  ;;  %p1061_p8 = scmp.lt.s32.totalorder %s1059_s12, %s1052_s30 }
  0x53   : > { %p1056_p6 = pneg %p1055_p4  ;;  %p1062_p13 = por %p1061_p8, %p1060_p7 }
  0x55   : > { %p1063_p0 = pnand %p1062_p13, %p1056_p6 }
  0x57   : > { %1066 = shalt.err (!%p1063_p0)
}
  0x58   : > { %s1184_s14 = smov 256   ;;  %s1185_s16 = smov 16  }
  0x59   : > { %915 = dma.hbm_to_vmem [thread:$0]  (!%p1393_p1), %s202_s11, 8192, %s204_s17, %s191_s27, %s1184_s14, %s1184_s14, %s1185_s16  }
  0x5a   : > { %p1623_p3 = scmp.ne.s32.totalorder %s1610_s21, 0 }
  0x5b   : > { %s225_s29 = sand.u32 (!%p1623_p3), 1, %s1161_s22   ;;  %p1624_p12 = scmp.ne.s32.totalorder (!%p1623_p3), %s1608_s7, 0 }
  0x5c   : > { %223 = sbr.rel (%p1623_p3) target bundleno = 453 (0x1c5), region = 32  ;;  %s879_s9 = sshll.u32 (!%p1623_p3), %s225_s29, 6 }
  0x5d   : > { %s226_s5 = scalar_lea.sflag (!%p1623_p3), [#allocation5], %s225_s29  ;;  %s1404_s6 = scalar_lea.vmem (!%p1623_p3), [#allocation4], %s879_s9 }
  0x61   : > { %1132 = dma.done.wait (%p1624_p12), %s226_s5, 1024  }
  0x62   : > { %1134 = vsyncadd (%p1624_p12), %s226_s5, 4294966272  ;;  %s1411_s1 = sand.u32 1, %s1149_s19  }
  0x63   : > { %s880_s21 = sshll.u32 %s1411_s1, 9  ;;  %s235_s11 = scalar_lea.sflag [#allocation8], %s1411_s1 }
  0x64   : > { %s1415_s17 = scalar_lea.vmem [#allocation7], %s880_s21 }
  0x65   : > { %1136 = dma.done.wait (%p1374_p10), %s235_s11, 8192  }
  0x66   : > { %1138 = vsyncadd (%p1374_p10), %s235_s11, 4294959104  ;;  %v306_v0 = vld [vmem:[%s1415_s17 + $0x38] sm:$0xff]  ;;  %v305_v2 = vld [vmem:[%s1415_s17 + $0x30] sm:$0xff]  ;;  %s882_s7 = sshll.u32 %s1169_s23, 1  ;;  %s881_s30 = sshll.u32 %s1411_s1, 5 }
  0x67   : > { %v322_v1 = vld [vmem:[%s1415_s17 + $0xb8] sm:$0xff]  ;;  %v376_v3 = vunpack.c.l.s8.bf16 %v306_v0  ;;  %v378_v4 = vunpack.c.h.s8.bf16 %v306_v0  ;;  %v321_v7 = vld [vmem:[%s1415_s17 + $0xb0] sm:$0xff]  ;;  %v377_v8 = vunpack.c.h.s8.bf16 %v305_v2  ;;  %v304_v10 = vld [vmem:[%s1415_s17 + $0x28] sm:$0xff]  ;;  %v375_v12 = vunpack.c.l.s8.bf16 %v305_v2  ;;  %p274_p10 = scmp.lt.s32.totalorder %s882_s7, 3  ;;  %s898_s12 = sshll.u32 %s1169_s23, 8 }
  0x68   : > { %v408_v5 = vunpack.c.l.s8.bf16 %v322_v1  ;;  %v410_v6 = vunpack.c.h.s8.bf16 %v322_v1  ;;  %v409_v9 = vunpack.c.h.s8.bf16 %v321_v7  ;;  %v320_v11 = vld [vmem:[%s1415_s17 + $0xa8] sm:$0xff]  ;;  %v407_v13 = vunpack.c.l.s8.bf16 %v321_v7  ;;  %v303_v16 = vld [vmem:[%s1415_s17 + $0x20] sm:$0xff]  ;;  %v302_v22 = vld [vmem:[%s1415_s17 + $0x18] sm:$0xff]  ;;  %s269_s14 = scalar_lea.vmem [#allocation9], %s881_s30  ;;  %s1534_s5 = scalar_lea.hbm %s1597_s4, %s898_s12 }
  0x69   : > { %531 = vmatprep.subr.bf16.mxu0 %v378_v4  ;;  %v374_v14 = vunpack.c.h.s8.bf16 %v304_v10  ;;  %v406_v15 = vunpack.c.h.s8.bf16 %v320_v11  ;;  %v319_v17 = vld [vmem:[%s1415_s17 + $0xa0] sm:$0xff]  ;;  %v373_v18 = vunpack.c.h.s8.bf16 %v303_v16  ;;  %v372_v20 = vunpack.c.l.s8.bf16 %v304_v10  ;;  %v318_v23 = vld [vmem:[%s1415_s17 + $0x98] sm:$0xff]  ;;  %v301_v28 = vld [vmem:[%s1415_s17 + $0x10] sm:$0xff]  ;;  %s1642_s7 = smov (!%p274_p10, %s882_s7), 3  ;;  %s752_s16 = sshll.u32 %s269_s14, 4  ;;  %s1536_s16 = int_to_ptr.vmem [resolvable:$true] %s752_s16 }
  0x6a   : > { %574 = vmatprep.subr.bf16.mxu1 %v410_v6  ;;  %532 = vmatpush1.bf16.msra.mxu0 %v377_v8  ;;  %v405_v19 = vunpack.c.h.s8.bf16 %v319_v17  ;;  %v404_v21 = vunpack.c.l.s8.bf16 %v320_v11  ;;  %v371_v24 = vunpack.c.l.s8.bf16 %v303_v16  ;;  %v403_v25 = vunpack.c.l.s8.bf16 %v319_v17  ;;  %v317_v29 = vld [vmem:[%s1415_s17 + $0x90] sm:$0xff]  ;;  %v1434_v30 = vld [vmem:[%s1404_s6] sm:$0xff]  ;;  %v1440_v32 = vld [vmem:[%s1404_s6 + $0x8] sm:$0xff]  ;;  %s276_s27 = scalar_lea.vmem %s1596_s3, %s1642_s7  ;;  %s739_s23 = scalar_lea.sflag [#allocation6], %s1411_s1 }
  0x6b   : > { %575 = vmatpush1.bf16.msra.mxu1 %v409_v9  ;;  %533 = vmatprep.subr.bf16.mxu0 %v376_v3  ;;  %v370_v26 = vunpack.c.h.s8.bf16 %v302_v22  ;;  %v402_v27 = vunpack.c.h.s8.bf16 %v318_v23  ;;  %v1437_v31 = vld [vmem:[%s1404_s6 + $0x20] sm:$0xff]  ;;  %v1443_v33 = vld [vmem:[%s1404_s6 + $0x28] sm:$0xff]  ;;  %v369_v34 = vunpack.c.h.s8.bf16 %v301_v28  ;;  %v401_v35 = vunpack.c.h.s8.bf16 %v317_v29  ;;  %v314_v52 = vld [vmem:[%s1415_s17 + $0x78] sm:$0xff]  ;;  %s1186_s21 = smov [#allocation9]  }
  0x6c   : > { %576 = vmatprep.subr.bf16.mxu1 %v408_v5  ;;  %v368_v36 = vunpack.c.l.s8.bf16 %v302_v22  ;;  %v400_v37 = vunpack.c.l.s8.bf16 %v318_v23  ;;  %v884_v38 = vcombine.high %v1434_v30, %v1437_v31  ;;  %v300_v39 = vld [vmem:[%s1415_s17 + $0x8] sm:$0xff]  ;;  %v886_v41 = vcombine.high %v1440_v32, %v1443_v33  ;;  %v299_v46 = vld [vmem:[%s1415_s17] sm:$0xff]  ;;  %v330_v53 = vld [vmem:[%s1415_s17 + $0xf8] sm:$0xff]  ;;  %s1071_s11 = sshll.u32 %s1186_s21, 4  ;;  %s1072_s11 = int_to_ptr.vmem [resolvable:$false] %s1071_s11 }
  0x6d   : > { %v316_v40 = vld [vmem:[%s1415_s17 + $0x88] sm:$0xff]  ;;  %v367_v42 = vunpack.c.l.s8.bf16 %v301_v28  ;;  %v399_v43 = vunpack.c.l.s8.bf16 %v317_v29  ;;  %v366_v44 = vunpack.c.h.s8.bf16 %v300_v39  ;;  %v315_v47 = vld [vmem:[%s1415_s17 + $0x80] sm:$0xff]  ;;  %v365_v48 = vunpack.c.h.s8.bf16 %v299_v46  ;;  %v313_v58 = vld [vmem:[%s1415_s17 + $0x70] sm:$0xff]  ;;  %p1074_p4 = scmp.lt.s32.totalorder %s1536_s16, %s1072_s11 }
  0x6e   : > { %534 = vmatpush1.bf16.msra.mxu0 %v375_v12  ;;  %563 = vmatprep.mubr.bf16.mxu0 %v884_v38  ;;  %v398_v45 = vunpack.c.h.s8.bf16 %v316_v40  ;;  %v397_v49 = vunpack.c.h.s8.bf16 %v315_v47  ;;  %v364_v50 = vunpack.c.l.s8.bf16 %v300_v39  ;;  %v396_v51 = vunpack.c.l.s8.bf16 %v316_v40  ;;  %v329_v59 = vld [vmem:[%s1415_s17 + $0xf0] sm:$0xff]  ;;  %v312_v0 = vld [vmem:[%s1415_s17 + $0x68] sm:$0xff]  ;;  %v311_v6 = vld [vmem:[%s1415_s17 + $0x60] sm:$0xff] }
  0x6f   : > { %577 = vmatpush1.bf16.msra.mxu1 %v407_v13  ;;  %535 = vmatprep.subr.bf16.mxu0 %v374_v14  ;;  %v363_v54 = vunpack.c.l.s8.bf16 %v299_v46  ;;  %v395_v55 = vunpack.c.l.s8.bf16 %v315_v47  ;;  %v394_v56 = vunpack.c.h.s8.bf16 %v314_v52  ;;  %v426_v57 = vunpack.c.h.s8.bf16 %v330_v53  ;;  %v328_v1 = vld [vmem:[%s1415_s17 + $0xe8] sm:$0xff]  ;;  %v327_v7 = vld [vmem:[%s1415_s17 + $0xe0] sm:$0xff]  ;;  %v310_v12 = vld [vmem:[%s1415_s17 + $0x58] sm:$0xff] }
  0x70   : > { %578 = vmatprep.subr.bf16.mxu1 %v406_v15  ;;  %606 = vmatprep.mubr.bf16.mxu1 %v886_v41  ;;  %v393_v60 = vunpack.c.h.s8.bf16 %v313_v58  ;;  %v425_v61 = vunpack.c.h.s8.bf16 %v329_v59  ;;  %v392_v62 = vunpack.c.l.s8.bf16 %v314_v52  ;;  %v424_v63 = vunpack.c.l.s8.bf16 %v330_v53  ;;  %v326_v13 = vld [vmem:[%s1415_s17 + $0xd8] sm:$0xff]  ;;  %v337_v46 = vld [vmem:[%s1415_s17 + $0x130] sm:$0xff] }
  0x71   : > { %v391_v2 = vunpack.c.l.s8.bf16 %v313_v58  ;;  %v423_v3 = vunpack.c.l.s8.bf16 %v329_v59  ;;  %v390_v4 = vunpack.c.h.s8.bf16 %v312_v0  ;;  %v422_v5 = vunpack.c.h.s8.bf16 %v328_v1  ;;  %v338_v40 = vld [vmem:[%s1415_s17 + $0x138] sm:$0xff]  ;;  %v353_v47 = vld [vmem:[%s1415_s17 + $0x1b0] sm:$0xff] }
  0x72   : > { %536 = vmatpush1.bf16.msra.mxu0 %v373_v18  ;;  %v389_v8 = vunpack.c.h.s8.bf16 %v311_v6  ;;  %v421_v9 = vunpack.c.h.s8.bf16 %v327_v7  ;;  %v388_v10 = vunpack.c.l.s8.bf16 %v312_v0  ;;  %v420_v11 = vunpack.c.l.s8.bf16 %v328_v1  ;;  %v309_v18 = vld [vmem:[%s1415_s17 + $0x50] sm:$0xff]  ;;  %v354_v41 = vld [vmem:[%s1415_s17 + $0x1b8] sm:$0xff] }
  0x73   : > { %579 = vmatpush1.bf16.msra.mxu1 %v405_v19  ;;  %537 = vmatprep.subr.bf16.mxu0 %v372_v20  ;;  %v387_v14 = vunpack.c.l.s8.bf16 %v311_v6  ;;  %v419_v15 = vunpack.c.l.s8.bf16 %v327_v7  ;;  %v386_v16 = vunpack.c.h.s8.bf16 %v310_v12  ;;  %v418_v17 = vunpack.c.h.s8.bf16 %v326_v13  ;;  %v325_v19 = vld [vmem:[%s1415_s17 + $0xd0] sm:$0xff]  ;;  %v1484_v52 = vld [vmem:[%s1404_s6 + $0x18] sm:$0xff] }
  0x74   : > { %580 = vmatprep.subr.bf16.mxu1 %v404_v21  ;;  %v385_v20 = vunpack.c.h.s8.bf16 %v309_v18  ;;  %v417_v21 = vunpack.c.h.s8.bf16 %v325_v19  ;;  %v384_v22 = vunpack.c.l.s8.bf16 %v310_v12  ;;  %v416_v23 = vunpack.c.l.s8.bf16 %v326_v13  ;;  %v1487_v53 = vld [vmem:[%s1404_s6 + $0x38] sm:$0xff] }
  0x75   : > { %v439_v58 = vunpack.c.l.s8.bf16 %v337_v46  ;;  %v471_v59 = vunpack.c.l.s8.bf16 %v353_v47 }
  0x76   : > { %538 = vmatpush1.bf16.msra.mxu0 %v371_v24  ;;  %v308_v24 = vld [vmem:[%s1415_s17 + $0x48] sm:$0xff] }
  0x77   : > { %581 = vmatpush1.bf16.msra.mxu1 %v403_v25  ;;  %539 = vmatprep.subr.bf16.mxu0 %v370_v26  ;;  %v324_v25 = vld [vmem:[%s1415_s17 + $0xc8] sm:$0xff]  ;;  %v383_v26 = vunpack.c.l.s8.bf16 %v309_v18  ;;  %v382_v28 = vunpack.c.h.s8.bf16 %v308_v24  ;;  %v380_v38 = vunpack.c.l.s8.bf16 %v308_v24 }
  0x78   : > { %582 = vmatprep.subr.bf16.mxu1 %v402_v27  ;;  %v415_v27 = vunpack.c.l.s8.bf16 %v325_v19  ;;  %v414_v29 = vunpack.c.h.s8.bf16 %v324_v25  ;;  %v412_v39 = vunpack.c.l.s8.bf16 %v324_v25 }
  0x7a   : > { %540 = vmatpush1.bf16.msra.mxu0 %v369_v34  ;;  %v307_v34 = vld [vmem:[%s1415_s17 + $0x40] sm:$0xff] }
  0x7b   : > { %583 = vmatpush1.bf16.msra.mxu1 %v401_v35  ;;  %541 = vmatprep.subr.bf16.mxu0 %v368_v36  ;;  %v323_v35 = vld [vmem:[%s1415_s17 + $0xc0] sm:$0xff]  ;;  %v381_v36 = vunpack.c.h.s8.bf16 %v307_v34 }
  0x7c   : > { %584 = vmatprep.subr.bf16.mxu1 %v400_v37  ;;  %v413_v37 = vunpack.c.h.s8.bf16 %v323_v35 }
  0x7e   : > { %542 = vmatpush1.bf16.msra.mxu0 %v367_v42  ;;  %v379_v42 = vunpack.c.l.s8.bf16 %v307_v34 }
  0x7f   : > { %585 = vmatpush1.bf16.msra.mxu1 %v399_v43  ;;  %543 = vmatprep.subr.bf16.mxu0 %v366_v44  ;;  %v411_v43 = vunpack.c.l.s8.bf16 %v323_v35  ;;  %v442_v44 = vunpack.c.h.s8.bf16 %v338_v40 }
  0x80   : > { %586 = vmatprep.subr.bf16.mxu1 %v398_v45  ;;  %v474_v45 = vunpack.c.h.s8.bf16 %v354_v41 }
  0x82   : > { %544 = vmatpush1.bf16.msra.mxu0 %v365_v48  ;;  %v1474_v48 = vld [vmem:[%s1404_s6 + $0x10] sm:$0xff] }
  0x83   : > { %587 = vmatpush1.bf16.msra.mxu1 %v397_v49  ;;  %545 = vmatprep.subr.bf16.mxu0 %v364_v50  ;;  %v883_v49 = vcombine.low %v1434_v30, %v1437_v31  ;;  %v885_v50 = vcombine.low %v1440_v32, %v1443_v33  ;;  %v336_v30 = vld [vmem:[%s1415_s17 + $0x128] sm:$0xff]  ;;  %v890_v33 = vcombine.high %v1484_v52, %v1487_v53 }
  0x84   : > { %588 = vmatprep.subr.bf16.mxu1 %v396_v51  ;;  %v1481_v51 = vld [vmem:[%s1404_s6 + $0x30] sm:$0xff]  ;;  %v352_v31 = vld [vmem:[%s1415_s17 + $0x1a8] sm:$0xff]  ;;  %s1067_s6 = scalar_lea.vmem %s1536_s16, 512 }
  0x85   : > { %v888_v32 = vcombine.high %v1474_v48, %v1481_v51  ;;  %p1068_p1 = scmp.ne.s32.totalorder %s1536_s16, %s1067_s6 }
  0x86   : > { %546 = vmatpush1.bf16.msra.mxu0 %v363_v54  ;;  %v441_v54 = vunpack.c.h.s8.bf16 %v337_v46 }
  0x87   : > { %589 = vmatpush1.bf16.msra.mxu1 %v395_v55  ;;  %547 = vmatprep.subr.bf16.mxu0 %v394_v56  ;;  %v473_v55 = vunpack.c.h.s8.bf16 %v353_v47  ;;  %v440_v56 = vunpack.c.l.s8.bf16 %v338_v40  ;;  %p1069_p5 = pnand %p1068_p1, %p1378_p11 }
  0x88   : > { %590 = vmatprep.subr.bf16.mxu1 %v426_v57  ;;  %v472_v57 = vunpack.c.l.s8.bf16 %v354_v41 }
  0x89   : > { %p1070_p2 = pneg %p1069_p5 }
  0x8a   : > { %548 = vmatpush2.bf16.msra.mxu0 %v393_v60  ;;  %v438_v60 = vunpack.c.h.s8.bf16 %v336_v30 }
  0x8b   : > { %591 = vmatpush2.bf16.msra.mxu1 %v425_v61  ;;  %549 = vmatprep.subr.bf16.mxu0 %v392_v62  ;;  %v470_v61 = vunpack.c.h.s8.bf16 %v352_v31  ;;  %v335_v62 = vld [vmem:[%s1415_s17 + $0x120] sm:$0xff] }
  0x8c   : > { %592 = vmatprep.subr.bf16.mxu1 %v424_v63  ;;  %v351_v63 = vld [vmem:[%s1415_s17 + $0x1a0] sm:$0xff]  ;;  %v437_v0 = vunpack.c.h.s8.bf16 %v335_v62  ;;  %v435_v6 = vunpack.c.l.s8.bf16 %v335_v62  ;;  %v341_v62 = vld [vmem:[%s1415_s17 + $0x150] sm:$0xff] }
  0x8d   : > { %v469_v1 = vunpack.c.h.s8.bf16 %v351_v63  ;;  %v467_v7 = vunpack.c.l.s8.bf16 %v351_v63  ;;  %v357_v63 = vld [vmem:[%s1415_s17 + $0x1d0] sm:$0xff] }
  0x8e   : > { %550 = vmatpush2.bf16.msra.mxu0 %v391_v2  ;;  %v436_v2 = vunpack.c.l.s8.bf16 %v336_v30 }
  0x8f   : > { %593 = vmatpush2.bf16.msra.mxu1 %v423_v3  ;;  %551 = vmatprep.subr.bf16.mxu0 %v390_v4  ;;  %v468_v3 = vunpack.c.l.s8.bf16 %v352_v31  ;;  %v334_v4 = vld [vmem:[%s1415_s17 + $0x118] sm:$0xff] }
  0x90   : > { %594 = vmatprep.subr.bf16.mxu1 %v422_v5  ;;  %v350_v5 = vld [vmem:[%s1415_s17 + $0x198] sm:$0xff] }
  0x92   : > { %552 = vmatpush2.bf16.msra.mxu0 %v389_v8  ;;  %v434_v8 = vunpack.c.h.s8.bf16 %v334_v4 }
  0x93   : > { %595 = vmatpush2.bf16.msra.mxu1 %v421_v9  ;;  %553 = vmatprep.subr.bf16.mxu0 %v388_v10  ;;  %v466_v9 = vunpack.c.h.s8.bf16 %v350_v5  ;;  %v333_v10 = vld [vmem:[%s1415_s17 + $0x110] sm:$0xff] }
  0x94   : > { %596 = vmatprep.subr.bf16.mxu1 %v420_v11  ;;  %v349_v11 = vld [vmem:[%s1415_s17 + $0x190] sm:$0xff]  ;;  %v433_v12 = vunpack.c.h.s8.bf16 %v333_v10  ;;  %v431_v18 = vunpack.c.l.s8.bf16 %v333_v10  ;;  %v339_v10 = vld [vmem:[%s1415_s17 + $0x140] sm:$0xff] }
  0x95   : > { %v465_v13 = vunpack.c.h.s8.bf16 %v349_v11  ;;  %v463_v19 = vunpack.c.l.s8.bf16 %v349_v11  ;;  %v355_v11 = vld [vmem:[%s1415_s17 + $0x1c0] sm:$0xff] }
  0x96   : > { %554 = vmatpush2.bf16.msra.mxu0 %v387_v14  ;;  %v432_v14 = vunpack.c.l.s8.bf16 %v334_v4  ;;  %v340_v4 = vld [vmem:[%s1415_s17 + $0x148] sm:$0xff] }
  0x97   : > { %597 = vmatpush2.bf16.msra.mxu1 %v419_v15  ;;  %555 = vmatprep.subr.bf16.mxu0 %v386_v16  ;;  %v464_v15 = vunpack.c.l.s8.bf16 %v350_v5  ;;  %v332_v16 = vld [vmem:[%s1415_s17 + $0x108] sm:$0xff] }
  0x98   : > { %598 = vmatprep.subr.bf16.mxu1 %v418_v17  ;;  %v348_v17 = vld [vmem:[%s1415_s17 + $0x188] sm:$0xff] }
  0x99   : > { %v356_v5 = vld [vmem:[%s1415_s17 + $0x1c8] sm:$0xff] }
  0x9a   : > { %556 = vmatpush2.bf16.msra.mxu0 %v385_v20  ;;  %v430_v20 = vunpack.c.h.s8.bf16 %v332_v16 }
  0x9b   : > { %599 = vmatpush2.bf16.msra.mxu1 %v417_v21  ;;  %557 = vmatprep.subr.bf16.mxu0 %v384_v22  ;;  %v462_v21 = vunpack.c.h.s8.bf16 %v348_v17  ;;  %v331_v22 = vld [vmem:[%s1415_s17 + $0x100] sm:$0xff] }
  0x9c   : > { %600 = vmatprep.subr.bf16.mxu1 %v416_v23  ;;  %v347_v23 = vld [vmem:[%s1415_s17 + $0x180] sm:$0xff]  ;;  %v429_v24 = vunpack.c.h.s8.bf16 %v331_v22  ;;  %v427_v34 = vunpack.c.l.s8.bf16 %v331_v22 }
  0x9d   : > { %v461_v25 = vunpack.c.h.s8.bf16 %v347_v23  ;;  %v459_v35 = vunpack.c.l.s8.bf16 %v347_v23 }
  0x9e   : > { %558 = vmatpush2.bf16.msra.mxu0 %v383_v26  ;;  %v428_v26 = vunpack.c.l.s8.bf16 %v332_v16  ;;  %v443_v16 = vunpack.c.l.s8.bf16 %v339_v10 }
  0x9f   : > { %601 = vmatpush2.bf16.msra.mxu1 %v415_v27  ;;  %559 = vmatprep.subr.bf16.mxu0 %v382_v28  ;;  %v460_v27 = vunpack.c.l.s8.bf16 %v348_v17  ;;  %v346_v28 = vld [vmem:[%s1415_s17 + $0x178] sm:$0xff]  ;;  %v475_v17 = vunpack.c.l.s8.bf16 %v355_v11 }
  0xa0   : > { %602 = vmatprep.subr.bf16.mxu1 %v414_v29  ;;  %v362_v29 = vld [vmem:[%s1415_s17 + $0x1f8] sm:$0xff] }
  0xa2   : > { %560 = vmatpush2.bf16.msra.mxu0 %v381_v36  ;;  %v458_v36 = vunpack.c.h.s8.bf16 %v346_v28 }
  0xa3   : > { %603 = vmatpush2.bf16.msra.mxu1 %v413_v37  ;;  %561 = vmatprep.subr.bf16.mxu0 %v380_v38  ;;  %v490_v37 = vunpack.c.h.s8.bf16 %v362_v29  ;;  %v345_v38 = vld [vmem:[%s1415_s17 + $0x170] sm:$0xff] }
  0xa4   : > { %604 = vmatprep.subr.bf16.mxu1 %v412_v39  ;;  %v361_v39 = vld [vmem:[%s1415_s17 + $0x1f0] sm:$0xff]  ;;  %v457_v40 = vunpack.c.h.s8.bf16 %v345_v38  ;;  %v455_v46 = vunpack.c.l.s8.bf16 %v345_v38 }
  0xa5   : > { %v489_v41 = vunpack.c.h.s8.bf16 %v361_v39  ;;  %v487_v47 = vunpack.c.l.s8.bf16 %v361_v39 }
  0xa6   : > { %562 = vmatpush2.bf16.msra.mxu0 %v379_v42  ;;  %v456_v42 = vunpack.c.l.s8.bf16 %v346_v28 }
  0xa7   : > { %605 = vmatpush2.bf16.msra.mxu1 %v411_v43  ;;  %617 = vmatprep.subr.bf16.mxu0 %v442_v44  ;;  %v488_v43 = vunpack.c.l.s8.bf16 %v362_v29  ;;  %v344_v44 = vld [vmem:[%s1415_s17 + $0x168] sm:$0xff] }
  0xa8   : > { %660 = vmatprep.subr.bf16.mxu1 %v474_v45  ;;  %v360_v45 = vld [vmem:[%s1415_s17 + $0x1e8] sm:$0xff]  ;;  %v452_v30 = vunpack.c.l.s8.bf16 %v344_v44 }
  0xa9   : > { %564 = vmatmul.mubr.bf16.vlgmr.msra.gmra.mxu0 %v883_v49  ;;  %v454_v49 = vunpack.c.h.s8.bf16 %v344_v44  ;;  %v484_v31 = vunpack.c.l.s8.bf16 %v360_v45 }
  0xaa   : > { %607 = vmatmul.mubr.bf16.vlgmr.msra.gmra.mxu1 %v885_v50  ;;  %618 = vmatpush1.bf16.msra.mxu0 %v441_v54  ;;  %v486_v50 = vunpack.c.h.s8.bf16 %v360_v45  ;;  %v343_v54 = vld [vmem:[%s1415_s17 + $0x160] sm:$0xff] }
  0xab   : > { %661 = vmatpush1.bf16.msra.mxu1 %v473_v55  ;;  %619 = vmatprep.subr.bf16.mxu0 %v440_v56  ;;  %v359_v55 = vld [vmem:[%s1415_s17 + $0x1e0] sm:$0xff]  ;;  %v453_v56 = vunpack.c.h.s8.bf16 %v343_v54 }
  0xac   : > { %662 = vmatprep.subr.bf16.mxu1 %v472_v57  ;;  %649 = vmatprep.mubr.bf16.mxu0 %v888_v32  ;;  %v485_v57 = vunpack.c.h.s8.bf16 %v359_v55  ;;  %v342_v32 = vld [vmem:[%s1415_s17 + $0x158] sm:$0xff] }
  0xad   : > { %692 = vmatprep.mubr.bf16.mxu1 %v890_v33  ;;  %v358_v33 = vld [vmem:[%s1415_s17 + $0x1d8] sm:$0xff]  ;;  %s1073_s17 = scalar_lea.vmem %s1072_s11, 1024 }
  0xae   : > { %620 = vmatpush1.bf16.msra.mxu0 %v439_v58  ;;  %v451_v58 = vunpack.c.l.s8.bf16 %v343_v54  ;;  %p1075_p6 = scmp.lt.s32.totalorder %s1073_s17, %s1067_s6 }
  0xaf   : > { %663 = vmatpush1.bf16.msra.mxu1 %v471_v59  ;;  %621 = vmatprep.subr.bf16.mxu0 %v438_v60  ;;  %v483_v59 = vunpack.c.l.s8.bf16 %v359_v55  ;;  %v450_v60 = vunpack.c.h.s8.bf16 %v342_v32 }
  0xb0   : > { %664 = vmatprep.subr.bf16.mxu1 %v470_v61  ;;  %v482_v61 = vunpack.c.h.s8.bf16 %v358_v33  ;;  %p1076_p7 = por %p1075_p6, %p1074_p4 }
  0xb2   : > { %622 = vmatpush1.bf16.msra.mxu0 %v437_v0  ;;  %v449_v0 = vunpack.c.h.s8.bf16 %v341_v62  ;;  %p1077_p8 = pnand %p1076_p7, %p1070_p2 }
  0xb3   : > { %665 = vmatpush1.bf16.msra.mxu1 %v469_v1  ;;  %623 = vmatprep.subr.bf16.mxu0 %v436_v2  ;;  %v481_v1 = vunpack.c.h.s8.bf16 %v357_v63  ;;  %v448_v2 = vunpack.c.l.s8.bf16 %v342_v32 }
  0xb4   : > { %666 = vmatprep.subr.bf16.mxu1 %v468_v3  ;;  %v480_v3 = vunpack.c.l.s8.bf16 %v358_v33 }
  0xb6   : > { %624 = vmatpush1.bf16.msra.mxu0 %v435_v6  ;;  %v447_v6 = vunpack.c.l.s8.bf16 %v341_v62 }
  0xb7   : > { %667 = vmatpush1.bf16.msra.mxu1 %v467_v7  ;;  %625 = vmatprep.subr.bf16.mxu0 %v434_v8  ;;  %v479_v7 = vunpack.c.l.s8.bf16 %v357_v63  ;;  %v446_v8 = vunpack.c.h.s8.bf16 %v340_v4 }
  0xb8   : > { %668 = vmatprep.subr.bf16.mxu1 %v466_v9  ;;  %v478_v9 = vunpack.c.h.s8.bf16 %v356_v5 }
  0xba   : > { %626 = vmatpush1.bf16.msra.mxu0 %v433_v12  ;;  %v445_v12 = vunpack.c.h.s8.bf16 %v339_v10 }
  0xbb   : > { %669 = vmatpush1.bf16.msra.mxu1 %v465_v13  ;;  %627 = vmatprep.subr.bf16.mxu0 %v432_v14  ;;  %v477_v13 = vunpack.c.h.s8.bf16 %v355_v11  ;;  %v444_v14 = vunpack.c.l.s8.bf16 %v340_v4 }
  0xbc   : > { %670 = vmatprep.subr.bf16.mxu1 %v464_v15  ;;  %v476_v15 = vunpack.c.l.s8.bf16 %v356_v5 }
  0xbe   : > { %628 = vmatpush1.bf16.msra.mxu0 %v431_v18  ;;  %v887_v18 = vcombine.low %v1474_v48, %v1481_v51 }
  0xbf   : > { %671 = vmatpush1.bf16.msra.mxu1 %v463_v19  ;;  %629 = vmatprep.subr.bf16.mxu0 %v430_v20  ;;  %v889_v19 = vcombine.low %v1484_v52, %v1487_v53 }
  0xc0   : > { %672 = vmatprep.subr.bf16.mxu1 %v462_v21 }
  0xc2   : > { %630 = vmatpush1.bf16.msra.mxu0 %v429_v24  ;;  %v720_v24 = vlaneseq }
  0xc3   : > { %673 = vmatpush1.bf16.msra.mxu1 %v461_v25  ;;  %631 = vmatprep.subr.bf16.mxu0 %v428_v26 }
  0xc4   : > { %674 = vmatprep.subr.bf16.mxu1 %v460_v27  ;;  %v721_v27 = vshrl.u32 %v720_v24, 7 }
  0xc6   : > { %632 = vmatpush1.bf16.msra.mxu0 %v427_v34  ;;  %v722_v53 = vsub.s32 0, %v721_v27  ;;  %v718_v34 = vld [vmem:[%s276_s27] sm:$0x3] }
  0xc7   : > { %675 = vmatpush1.bf16.msra.mxu1 %v459_v35  ;;  %633 = vmatprep.subr.bf16.mxu0 %v458_v36  ;;  %v726_v35 = vsub.s32 1, %v721_v27 }
  0xc8   : > { %676 = vmatprep.subr.bf16.mxu1 %v490_v37 }
  0xc9   : > { %v727_v44 = vrot.slane %v718_v34, %v726_v35 }
  0xca   : > { %634 = vmatpush2.bf16.msra.mxu0 %v457_v40 }
  0xcb   : > { %677 = vmatpush2.bf16.msra.mxu1 %v489_v41  ;;  %635 = vmatprep.subr.bf16.mxu0 %v456_v42  ;;  %v723_v42 = vrot.slane %v718_v34, %v722_v53 }
  0xcc   : > { %678 = vmatprep.subr.bf16.mxu1 %v488_v43 }
  0xce   : > { %636 = vmatpush2.bf16.msra.mxu0 %v455_v46 }
  0xcf   : > { %679 = vmatpush2.bf16.msra.mxu1 %v487_v47  ;;  %637 = vmatprep.subr.bf16.mxu0 %v454_v49 }
  0xd0   : > { %680 = vmatprep.subr.bf16.mxu1 %v486_v50 }
  0xd2   : > { %638 = vmatpush2.bf16.msra.mxu0 %v453_v56 }
  0xd3   : > { %681 = vmatpush2.bf16.msra.mxu1 %v485_v57  ;;  %639 = vmatprep.subr.bf16.mxu0 %v452_v30 }
  0xd4   : > { %682 = vmatprep.subr.bf16.mxu1 %v484_v31 }
  0xd6   : > { %640 = vmatpush2.bf16.msra.mxu0 %v451_v58 }
  0xd7   : > { %683 = vmatpush2.bf16.msra.mxu1 %v483_v59  ;;  %641 = vmatprep.subr.bf16.mxu0 %v450_v60 }
  0xd8   : > { %684 = vmatprep.subr.bf16.mxu1 %v482_v61 }
  0xda   : > { %642 = vmatpush2.bf16.msra.mxu0 %v449_v0 }
  0xdb   : > { %685 = vmatpush2.bf16.msra.mxu1 %v481_v1  ;;  %643 = vmatprep.subr.bf16.mxu0 %v448_v2 }
  0xdc   : > { %686 = vmatprep.subr.bf16.mxu1 %v480_v3 }
  0xde   : > { %644 = vmatpush2.bf16.msra.mxu0 %v447_v6 }
  0xdf   : > { %687 = vmatpush2.bf16.msra.mxu1 %v479_v7  ;;  %645 = vmatprep.subr.bf16.mxu0 %v446_v8 }
  0xe0   : > { %688 = vmatprep.subr.bf16.mxu1 %v478_v9 }
  0xe2   : > { %646 = vmatpush2.bf16.msra.mxu0 %v445_v12 }
  0xe3   : > { %689 = vmatpush2.bf16.msra.mxu1 %v477_v13  ;;  %647 = vmatprep.subr.bf16.mxu0 %v444_v14 }
  0xe4   : > { %690 = vmatprep.subr.bf16.mxu1 %v476_v15 }
  0xe6   : > { %648 = vmatpush2.bf16.msra.mxu0 %v443_v16 }
  0xe7   : > { %691 = vmatpush2.bf16.msra.mxu1 %v475_v17 }
  0xe9   : > { %650 = vmatmul.mubr.bf16.vlgmr.msra.gmra.mxu0 %v887_v18 }
  0xea   : > { %693 = vmatmul.mubr.bf16.vlgmr.msra.gmra.mxu1 %v889_v19 }
 0x169   : > { %v565_v20 = vpop.f32.mrf.mxu0 }
 0x16a   : > { %v608_v21 = vpop.f32.mrf.mxu1 }
 0x16b   : > { %v567_v22 = vpop.f32.mrf.mxu0  ;;  %v609_v52 = vadd.f32 %v608_v21, %v565_v20 }
 0x16c   : > { %v610_v23 = vpop.f32.mrf.mxu1 }
 0x16d   : > { %v569_v25 = vpop.f32.mrf.mxu0  ;;  %v611_v36 = vadd.f32 %v610_v23, %v567_v22 }
 0x16e   : > { %v612_v26 = vpop.f32.mrf.mxu1 }
 0x16f   : > { %v571_v48 = vpop.f32.mrf.mxu0  ;;  %v613_v40 = vadd.f32 %v612_v26, %v569_v25 }
 0x170   : > { %v614_v51 = vpop.f32.mrf.mxu1 }
 0x171   : > { %v615_v47 = vadd.f32 %v614_v51, %v571_v48 }
 0x1a9   : > { %v651_v28 = vpop.f32.mrf.mxu0 }
 0x1aa   : > { %v694_v29 = vpop.f32.mrf.mxu1  ;;  %v652_v37 = vadd.f32 %v651_v28, %v609_v52 }
 0x1ab   : > { %v653_v38 = vpop.f32.mrf.mxu0 }
 0x1ac   : > { %v696_v39 = vpop.f32.mrf.mxu1  ;;  %v695_v41 = vadd.f32 %v694_v29, %v652_v37  ;;  %v654_v43 = vadd.f32 %v653_v38, %v611_v36 }
 0x1ad   : > { %v655_v45 = vpop.f32.mrf.mxu0 }
 0x1ae   : > { %v698_v46 = vpop.f32.mrf.mxu1  ;;  %v697_v49 = vadd.f32 %v696_v39, %v654_v43  ;;  %v656_v50 = vadd.f32 %v655_v45, %v613_v40  ;;  %v730_v55 = vmul.f32 %v723_v42, %v695_v41 }
 0x1af   : > { %v657_v54 = vpop.f32.mrf.mxu0 }
 0x1b0   : > { %v699_v56 = vadd.f32 %v698_v46, %v656_v50  ;;  %v658_v57 = vadd.f32 %v657_v54, %v615_v47  ;;  %v700_v30 = vpop.f32.mrf.mxu1  ;;  %734 = vst [vmem:[%s269_s14] sm:$0xff] %v730_v55  ;;  %v731_v31 = vmul.f32 %v727_v44, %v697_v49 }
 0x1b2   : > { %v701_v32 = vadd.f32 %v700_v30, %v658_v57  ;;  %735 = vst [vmem:[%s269_s14 + $0x8] sm:$0xff] %v731_v31  ;;  %v732_v33 = vmul.f32 %v723_v42, %v699_v56 }
 0x1b4   : > { %736 = vst [vmem:[%s269_s14 + $0x10] sm:$0xff] %v732_v33  ;;  %v733_v58 = vmul.f32 %v727_v44, %v701_v32 }
 0x1b6   : > { %737 = vst [vmem:[%s269_s14 + $0x18] sm:$0xff] %v733_v58 }
 0x1b7   : > { %1080 = shalt.err (!%p1077_p8)
}
 0x1b8   : > { %s1081_s7 = scalar_lea.hbm %s1534_s5, 512  ;;  %s1085_s27 = scalar_lea.hbm %s1597_s4, 1024 }
 0x1b9   : > { %p1082_p13 = scmp.ne.s32.totalorder %s1534_s5, %s1081_s7  ;;  %p1086_p12 = scmp.lt.s32.totalorder %s1534_s5, %s1597_s4 }
 0x1ba   : > { %p1087_p10 = scmp.lt.s32.totalorder %s1085_s27, %s1081_s7 }
 0x1bb   : > { %p1083_p0 = pnand %p1082_p13, %p1378_p11 }
 0x1bc   : > { %p1088_p1 = por %p1087_p10, %p1086_p12 }
 0x1bd   : > { %p1084_p3 = pneg %p1083_p0 }
 0x1bf   : > { %p1089_p5 = pnand %p1088_p1, %p1084_p3 }
 0x1c1   : > { %1092 = shalt.err (!%p1089_p5)
}
 0x1c2   : > { %s1187_s14 = smov 256   ;;  %s1188_s29 = smov 512  }
 0x1c3   : > { %s1189_s9 = smov 16  }
 0x1c4   : > { %905 = dma.vmem_to_hbm [thread:$0]  (%p1378_p11), %s1536_s16, 512, %s1534_s5, %s739_s23, %s1187_s14, %s1188_s29, %s1189_s9  }
 0x1c5 PF: > { %s767_s6 = sand.u32 1, %s1145_s18   ;;  %p1625_p2 = scmp.ge.s32.totalorder %s1177_s25, 2 }
 0x1c6   : > { %s768_s21 = scalar_lea.sflag [#allocation6], %s767_s6 }
 0x1c7   : > { %p917_p4 = pnand %p1625_p2, %p1382_p9 }
 0x1c9   : > { %p918_p6 = pneg %p917_p4 }
 0x1cb   : > { %1140 = dma.done.wait (%p918_p6), %s768_s21, 512  }
 0x1cc   : > { %1142 = vsyncadd (%p918_p6), %s768_s21, 4294966784  ;;  %s27_s25 = sadd.s32 1, %s1177_s25   ;;  %s1626_s10 = sld [smem:[#allocation16_spill]] }
 0x1cd   : > { %p24_p7 = scmp.ge.s32.totalorder %s27_s25, 4   ;;  %s1627_s18 = smov %s1149_s19 }
 0x1ce   : > { %s1628_s19 = smov %s1153_s20  ;;  %s1629_s20 = smov %s1360_s28 }
 0x1cf   : > { %s1630_s21 = smov %s1161_s22  ;;  %s1631_s22 = smov %s1165_s0 }
 0x1d0   : > { %s1632_s0 = smov %s1306_s15  ;;  %s1633_s23 = smov %s1173_s24 }
 0x1d1   :  { %26 = sbr.rel (!%p24_p7) target bundleno = 16 (0x10), region = 101 }
 0x1d2   : > { %s1634_s24 = smov %s1626_s10 }
 0x1d6   :  { %773 = vsyncpa [#allocation5], 1 }
 0x1d7   :  { %775 = vsyncpa [#allocation5 + $0x1], 1 }
 0x1d8   :  { %776 = vsyncpa [#allocation8], 1 }
 0x1d9   :  { %778 = vsyncpa [#allocation8 + $0x1], 1 }
 0x1da   :  { %779 = vsyncpa [#allocation6], 1 }
 0x1db   :  { %781 = vsyncpa [#allocation6 + $0x1], 1 }

</bundles_post_ra>
